<compile_context>
chip_gen: v5e
topology: v5e:2x2
jax: 0.10.0
libtpu: 0.0.40
codegen_flags: <defaults>
</compile_context>

<pallas_src>
import functools

import numpy as np
import jax
import jax.numpy as jnp
from jax import lax
from jax.experimental import pallas as pl
from jax.experimental.pallas import tpu as pltpu


_LANE = 128                       # feat / K padding granularity (lane width)
_MAX_TILE_M = 1024                # max output-row tile
_MAX_TILE_K = 1024                # max reduction tile
_RHS_RESIDENT_MAX_BYTES = 12 * 1024 * 1024   # keep whole RHS in VMEM below this


def _round_up(n, m):
    return ((n + m - 1) // m) * m


def _vmem_limit_bytes():
    """Generation-aware scoped-VMEM limit (~75% of physical, capped at 96 MiB)."""
    cap = 64 * 1024 * 1024
    try:
        info = pltpu.get_tpu_info()
        cap = int(getattr(info, "vmem_capacity_bytes", cap))
    except Exception:
        pass
    return int(max(32 * 1024 * 1024, min(cap * 3 // 4, 96 * 1024 * 1024)))


# ---------------------------------------------------------------------------
# Stage-1 kernel: x_e = relu(inv_deg_e * (C1 @ x))   (accumulate over V tiles)
# bf16 output -> keep a dedicated f32 VMEM accumulator.
# ---------------------------------------------------------------------------
def _v2e_kernel(c_ref, x_ref, scale_ref, xe_ref, acc_ref, *, tile_k, rhs_resident):
    k = pl.program_id(1)

    @pl.when(k == 0)
    def _():
        acc_ref[...] = jnp.zeros_like(acc_ref)

    if rhs_resident:
        start = pl.multiple_of(k * tile_k, tile_k)
        rhs = x_ref[pl.ds(start, tile_k), :]
    else:
        rhs = x_ref[...]
    acc_ref[...] += jnp.dot(c_ref[...].astype(jnp.bfloat16), rhs,
                            preferred_element_type=jnp.float32)

    @pl.when(k == pl.num_programs(1) - 1)
    def _():
        xe_ref[...] = jnp.maximum(acc_ref[...] * scale_ref[...], 0.0
                                  ).astype(xe_ref.dtype)


# ---------------------------------------------------------------------------
# Stage-2 kernel: out = l2norm_rows(relu(inv_deg_v * (C2 @ x_e)))
# out_ref is f32 and its block index is constant over k, so it IS the
# accumulator (no scratch).  Scale / ReLU / normalize run only at finalize.
# ---------------------------------------------------------------------------
def _e2v_norm_kernel(c_ref, xe_ref, scale_ref, out_ref, *, tile_k, rhs_resident):
    k = pl.program_id(1)

    @pl.when(k == 0)
    def _():
        out_ref[...] = jnp.zeros_like(out_ref)

    if rhs_resident:
        start = pl.multiple_of(k * tile_k, tile_k)
        rhs = xe_ref[pl.ds(start, tile_k), :]
    else:
        rhs = xe_ref[...]
    out_ref[...] += jnp.dot(c_ref[...].astype(jnp.bfloat16), rhs,
                            preferred_element_type=jnp.float32)

    @pl.when(k == pl.num_programs(1) - 1)
    def _():
        y = jnp.maximum(out_ref[...] * scale_ref[...], 0.0)
        ss = jnp.sum(y * y, axis=1, keepdims=True)
        # F.normalize(y, dim=1, p=2) == y / max(||y||, 1e-12)
        #                            == y * rsqrt(max(ss, 1e-24));
        # all-zero rows stay exactly zero (0 * rsqrt(1e-24) == 0).
        out_ref[...] = y * lax.rsqrt(jnp.maximum(ss, 1e-24))


# ---------------------------------------------------------------------------
# Shared pallas_call wrapper for both stages.
# ---------------------------------------------------------------------------
def _agg_stage(kernel_body, counts, rhs, scale, *, tile_m, tile_k, out_dtype,
               use_scratch, vmem_limit, transcendentals=0):
    M, K = counts.shape
    K2, F = rhs.shape
    assert K == K2 and M % tile_m == 0 and K % tile_k == 0
    assert scale.shape == (M, 1)

    rhs_bytes = rhs.size * rhs.dtype.itemsize
    rhs_resident = rhs_bytes <= _RHS_RESIDENT_MAX_BYTES

    kernel = functools.partial(kernel_body, tile_k=tile_k,
                               rhs_resident=rhs_resident)

    if rhs_resident:
        rhs_spec = pl.BlockSpec((K, F), lambda i, k: (0, 0))   # resident, DMA'd once
        rhs_fetches = 1
    else:
        rhs_spec = pl.BlockSpec((tile_k, F), lambda i, k: (k, 0))
        rhs_fetches = M // tile_m                               # re-streamed per row tile

    scratch = [pltpu.VMEM((tile_m, F), jnp.float32)] if use_scratch else []

    bytes_accessed = (counts.size * counts.dtype.itemsize
                      + rhs_fetches * rhs_bytes
                      + scale.size * scale.dtype.itemsize
                      + M * F * np.dtype(out_dtype).itemsize)

    return pl.pallas_call(
        kernel,
        out_shape=jax.ShapeDtypeStruct((M, F), out_dtype),
        grid_spec=pltpu.PrefetchScalarGridSpec(
            num_scalar_prefetch=0,
            grid=(M // tile_m, K // tile_k),
            in_specs=[
                pl.BlockSpec((tile_m, tile_k), lambda i, k: (i, k)),  # int8 counts
                rhs_spec,                                             # bf16 features
                pl.BlockSpec((tile_m, 1), lambda i, k: (i, 0)),       # f32 1/deg
            ],
            out_specs=pl.BlockSpec((tile_m, F), lambda i, k: (i, 0)),
            scratch_shapes=scratch,
        ),
        compiler_params=pltpu.CompilerParams(
            dimension_semantics=("parallel", "arbitrary"),
            vmem_limit_bytes=vmem_limit,
        ),
        cost_estimate=pl.CostEstimate(
            flops=2 * M * K * F,
            transcendentals=transcendentals,
            bytes_accessed=bytes_accessed,
        ),
    )(counts, rhs, scale)


# ---------------------------------------------------------------------------
# Glue: dense int8 incidence counts + f32 inverse-degree vectors.
# Equivalent to the torch.sparse mean-aggregation matrices
#   M1 = diag(inv_deg_e) @ C1,  M2 = diag(inv_deg_v) @ C2
# with duplicate (v, e) pairs summed, matching torch.sparse.mm coalescing.
# ---------------------------------------------------------------------------
def build_incidence(edge, size_v, size_e, *, v_pad, e_pad):
    v_idx = edge[0].astype(jnp.int32)
    e_idx = edge[1].astype(jnp.int32)
    ones = jnp.ones(v_idx.shape[0], jnp.float32)

    deg_e = jnp.zeros((e_pad,), jnp.float32).at[e_idx].add(ones)
    deg_v = jnp.zeros((v_pad,), jnp.float32).at[v_idx].add(ones)
    # max(deg, 1): ids that never occur have all-zero count rows anyway, so the
    # result is unchanged and no inf intermediates are produced.
    inv_deg_e = (1.0 / jnp.maximum(deg_e, 1.0)).reshape(e_pad, 1)
    inv_deg_v = (1.0 / jnp.maximum(deg_v, 1.0)).reshape(v_pad, 1)

    # int8 counts assume < 128 duplicates of any single (v, e) pair.
    c1 = jnp.zeros((e_pad, v_pad), jnp.int32).at[e_idx, v_idx].add(1)
    c1 = c1.astype(jnp.int8)
    c2 = c1.T
    return c1, c2, inv_deg_e, inv_deg_v


@functools.partial(jax.jit, static_argnums=(2, 3))
def gcn_v2e2v_forward(x, edge, size_v, size_e):
    feat = x.shape[1]
    f_pad = _round_up(feat, _LANE)          # lane-dense output; never pad past need

    tile_k_v = min(_MAX_TILE_K, _round_up(size_v, _LANE))
    tile_k_e = min(_MAX_TILE_K, _round_up(size_e, _LANE))
    v_pad = _round_up(size_v, tile_k_v)
    e_pad = _round_up(size_e, tile_k_e)
    # Row tiles: divide the padded dim, stay a multiple of 64 (safe for int8
    # sublane packing), and always give >= 2 row tiles so both v7x TensorCores
    # get work from the "parallel" axis.
    tile_m_e = min(_MAX_TILE_M, e_pad // 2)
    tile_m_v = min(_MAX_TILE_M, v_pad // 2)

    vmem_limit = _vmem_limit_bytes()

    c1, c2, inv_deg_e, inv_deg_v = build_incidence(
        edge, size_v, size_e, v_pad=v_pad, e_pad=e_pad)

    x_pad = jnp.zeros((v_pad, f_pad), jnp.bfloat16).at[:size_v, :feat].set(
        x.astype(jnp.bfloat16))

    # Stage 1: V -> E mean aggregation + ReLU (bf16 out, f32 accumulate).
    x_e = _agg_stage(_v2e_kernel, c1, x_pad, inv_deg_e,
                     tile_m=tile_m_e, tile_k=tile_k_v,
                     out_dtype=jnp.bfloat16, use_scratch=True,
                     vmem_limit=vmem_limit)
    # Stage 2: E -> V mean aggregation + ReLU + per-row L2 normalization.
    out = _agg_stage(_e2v_norm_kernel, c2, x_e, inv_deg_v,
                     tile_m=tile_m_v, tile_k=tile_k_e,
                     out_dtype=jnp.float32, use_scratch=False,
                     vmem_limit=vmem_limit, transcendentals=v_pad)
    return out[:size_v, :feat]


# ---------------------------------------------------------------------------
# Plain-JAX references.
#   * _bf16 mirrors the kernel's numerics (bf16 features, f32 scale/acc).
#   * _f32 mirrors the PyTorch module exactly in f32.
# ---------------------------------------------------------------------------
def _incidence_f32(edge, size_v, size_e):
    v_idx = edge[0].astype(jnp.int32)
    e_idx = edge[1].astype(jnp.int32)
    ones = jnp.ones(v_idx.shape[0], jnp.float32)
    deg_e = jnp.zeros((size_e,), jnp.float32).at[e_idx].add(ones)
    deg_v = jnp.zeros((size_v,), jnp.float32).at[v_idx].add(ones)
    c1 = jnp.zeros((size_e, size_v), jnp.float32).at[e_idx, v_idx].add(ones)
    return c1, c1.T, deg_e, deg_v


def gcn_v2e2v_reference_bf16(x, edge, size_v, size_e):
    c1, c2, deg_e, deg_v = _incidence_f32(edge, size_v, size_e)
    inv_e = (1.0 / jnp.maximum(deg_e, 1.0))[:, None]
    inv_v = (1.0 / jnp.maximum(deg_v, 1.0))[:, None]
    hp = lax.Precision.HIGHEST
    xb = x.astype(jnp.bfloat16).astype(jnp.float32)
    x_e = jax.nn.relu(inv_e * jnp.dot(c1, xb, precision=hp))
    x_e = x_e.astype(jnp.bfloat16).astype(jnp.float32)
    x_v = jax.nn.relu(inv_v * jnp.dot(c2, x_e, precision=hp))
    ss = jnp.sum(x_v * x_v, axis=1, keepdims=True)
    return x_v * lax.rsqrt(jnp.maximum(ss, 1e-24))


def gcn_v2e2v_reference_f32(x, edge, size_v, size_e):
    v_idx = edge[0].astype(jnp.int32)
    e_idx = edge[1].astype(jnp.int32)
    ones = jnp.ones(v_idx.shape[0], jnp.float32)
    deg_e = jnp.zeros((size_e,), jnp.float32).at[e_idx].add(ones)
    deg_v = jnp.zeros((size_v,), jnp.float32).at[v_idx].add(ones)
    w_e = (1.0 / deg_e)[e_idx]
    w_v = (1.0 / deg_v)[v_idx]
    m1 = jnp.zeros((size_e, size_v), jnp.float32).at[e_idx, v_idx].add(w_e)
    m2 = jnp.zeros((size_v, size_e), jnp.float32).at[v_idx, e_idx].add(w_v)
    hp = lax.Precision.HIGHEST
    x_e = jax.nn.relu(jnp.dot(m1, x, precision=hp))
    x_v = jax.nn.relu(jnp.dot(m2, x_e, precision=hp))
    norm = jnp.sqrt(jnp.sum(x_v * x_v, axis=1, keepdims=True))
    return x_v / jnp.maximum(norm, 1e-12)


if __name__ == "__main__":
    size_v, size_e, feat, nnz = 16, 8, 32, 40

    key = jax.random.PRNGKey(0)
    k_x, k_vi, k_ei = jax.random.split(key, 3)

    # node features [size_v, feat]
    x = jax.random.normal(k_x, (size_v, feat), dtype=jnp.float32)

    # edge: [3, nnz] int32; row0 = vertex idx, row1 = hyperedge idx, row2 unused
    v_idx = jax.random.randint(k_vi, (nnz,), 0, size_v, dtype=jnp.int32)
    e_idx = jax.random.randint(k_ei, (nnz,), 0, size_e, dtype=jnp.int32)
    edge = jnp.stack([v_idx, e_idx, jnp.zeros((nnz,), jnp.int32)], axis=0)

    out = gcn_v2e2v_forward(x, edge, size_v, size_e)
    out = jax.block_until_ready(out)
    assert out.shape == (size_v, feat)

    # Kernel-consistent (bf16 features) reference.
    ref_bf16 = gcn_v2e2v_reference_bf16(x, edge, size_v, size_e)
    err_bf16 = float(jnp.max(jnp.abs(out - ref_bf16)))
    assert err_bf16 < 1e-2, err_bf16

    # Exact f32 (PyTorch-equivalent) reference, loose tolerance for bf16 features.
    ref_f32 = gcn_v2e2v_reference_f32(x, edge, size_v, size_e)
    err_f32 = float(jnp.max(jnp.abs(out - ref_f32)))
    assert err_f32 < 3e-2, err_f32

    print("KERNEL_OK")
</pallas_src>

<mosaic_0001>
module attributes {stable_mosaic.version = 11 : i64} {
  func.func @_v2e_kernel(%arg0: i32, %arg1: i32, %arg2: memref<64x128xi8, #tpu.memory_space<vmem>>, %arg3: memref<128x128xbf16, #tpu.memory_space<vmem>>, %arg4: memref<64x1xf32, #tpu.memory_space<vmem>>, %arg5: memref<64x128xbf16, #tpu.memory_space<vmem>>, %arg6: memref<64x128xf32, #tpu.memory_space<vmem>>) attributes {dimension_semantics = [#tpu.dimension_semantics<parallel>, #tpu.dimension_semantics<arbitrary>], iteration_bounds = array<i64: 2, 1>, scalar_prefetch = 0 : i64, scratch_operands = 1 : i64, tpu.core_type = #tpu.core_type<tc>, window_params = [{transform_indices = @transform_0, window_bounds = array<i64: 64, 128>}, {pipeline_mode = #tpu.pipeline_mode<synchronous>, transform_indices = @transform_1, window_bounds = array<i64: 128, 128>}, {transform_indices = @transform_2, window_bounds = array<i64: 64, 1>}, {transform_indices = @transform_3, window_bounds = array<i64: 64, 128>}]} {
    %c0_i32 = arith.constant 0 : i32
    %0 = arith.cmpi eq, %arg1, %c0_i32 : i32
    %1 = arith.extui %0 : i1 to i32
    %c0_i32_0 = arith.constant 0 : i32
    %2 = arith.cmpi ne, %1, %c0_i32_0 : i32
    scf.if %2 {
      %cst_9 = arith.constant 0.000000e+00 : f32
      %16 = vector.broadcast %cst_9 : f32 to vector<64x128xf32>
      %c0_10 = arith.constant 0 : index
      %c0_11 = arith.constant 0 : index
      %17 = vector.load %arg6[%c0_10, %c0_11] : memref<64x128xf32, #tpu.memory_space<vmem>>, vector<64x128xf32>
      tpu.vector_store %arg6[%c0_10, %c0_11], %16 {strides = array<i32>} : memref<64x128xf32, #tpu.memory_space<vmem>>, vector<64x128xf32>,
    } else {
    }
    %c128_i32 = arith.constant 128 : i32
    %3 = arith.muli %arg1, %c128_i32 : i32
    %4 = tpu.assume_multiple %3, 128 : i32
    %5 = arith.index_cast %4 : i32 to index
    %c0 = arith.constant 0 : index
    %6 = vector.load %arg3[%5, %c0] : memref<128x128xbf16, #tpu.memory_space<vmem>>, vector<128x128xbf16>
    %c0_1 = arith.constant 0 : index
    %c0_2 = arith.constant 0 : index
    %7 = vector.load %arg6[%c0_1, %c0_2] : memref<64x128xf32, #tpu.memory_space<vmem>>, vector<64x128xf32>
    %c0_3 = arith.constant 0 : index
    %c0_4 = arith.constant 0 : index
    %8 = vector.load %arg2[%c0_3, %c0_4] : memref<64x128xi8, #tpu.memory_space<vmem>>, vector<64x128xi8>
    %9 = arith.sitofp %8 : vector<64x128xi8> to vector<64x128xbf16>
    %cst = arith.constant dense<0.000000e+00> : vector<64x128xf32>
    %10 = tpu.matmul %9, %6, %cst {dimension_numbers = #tpu.dot_dimension_numbers<[1], [0], [0], [1], [0, 0, 1, 1], [], []>} : vector<64x128xbf16>, vector<128x128xbf16>, vector<64x128xf32> -> vector<64x128xf32>
    %11 = arith.addf %7, %10 : vector<64x128xf32>
    %c0_5 = arith.constant 0 : index
    %c0_6 = arith.constant 0 : index
    %12 = vector.load %arg6[%c0_5, %c0_6] : memref<64x128xf32, #tpu.memory_space<vmem>>, vector<64x128xf32>
    tpu.vector_store %arg6[%c0_5, %c0_6], %11 {strides = array<i32>} : memref<64x128xf32, #tpu.memory_space<vmem>>, vector<64x128xf32>,
    %c0_i32_7 = arith.constant 0 : i32
    %13 = arith.cmpi eq, %arg1, %c0_i32_7 : i32
    %14 = arith.extui %13 : i1 to i32
    %c0_i32_8 = arith.constant 0 : i32
    %15 = arith.cmpi ne, %14, %c0_i32_8 : i32
    scf.if %15 {
      %c0_9 = arith.constant 0 : index
      %c0_10 = arith.constant 0 : index
      %16 = vector.load %arg6[%c0_9, %c0_10] : memref<64x128xf32, #tpu.memory_space<vmem>>, vector<64x128xf32>
      %c0_11 = arith.constant 0 : index
      %c0_12 = arith.constant 0 : index
      %17 = vector.load %arg4[%c0_11, %c0_12] : memref<64x1xf32, #tpu.memory_space<vmem>>, vector<64x1xf32>
      %18 = vector.broadcast %17 : vector<64x1xf32> to vector<64x128xf32>
      %19 = arith.mulf %16, %18 : vector<64x128xf32>
      %cst_13 = arith.constant 0.000000e+00 : f32
      %20 = vector.broadcast %cst_13 : f32 to vector<64x128xf32>
      %21 = arith.maximumf %19, %20 : vector<64x128xf32>
      %22 = arith.truncf %21 : vector<64x128xf32> to vector<64x128xbf16>
      %c0_14 = arith.constant 0 : index
      %c0_15 = arith.constant 0 : index
      %23 = vector.load %arg5[%c0_14, %c0_15] : memref<64x128xbf16, #tpu.memory_space<vmem>>, vector<64x128xbf16>
      tpu.vector_store %arg5[%c0_14, %c0_15], %22 {strides = array<i32>} : memref<64x128xbf16, #tpu.memory_space<vmem>>, vector<64x128xbf16>,
    } else {
    }
    return
  }
  func.func @transform_0(%arg0: i32, %arg1: i32) -> (i32, i32) {
    %c0_i32 = arith.constant 0 : i32
    return %arg0, %arg1 : i32, i32
  }
  func.func @transform_1(%arg0: i32, %arg1: i32) -> (i32, i32) {
    %c0_i32 = arith.constant 0 : i32
    %c0_i32_0 = arith.constant 0 : i32
    %c0_i32_1 = arith.constant 0 : i32
    return %c0_i32, %c0_i32_0 : i32, i32
  }
  func.func @transform_2(%arg0: i32, %arg1: i32) -> (i32, i32) {
    %c0_i32 = arith.constant 0 : i32
    %c0_i32_0 = arith.constant 0 : i32
    return %arg0, %c0_i32 : i32, i32
  }
  func.func @transform_3(%arg0: i32, %arg1: i32) -> (i32, i32) {
    %c0_i32 = arith.constant 0 : i32
    %c0_i32_0 = arith.constant 0 : i32
    return %arg0, %c0_i32 : i32, i32
  }
}

module attributes {stable_mosaic.version = 11 : i64} {
  func.func @_e2v_norm_kernel(%arg0: i32, %arg1: i32, %arg2: memref<64x128xi8, #tpu.memory_space<vmem>>, %arg3: memref<128x128xbf16, #tpu.memory_space<vmem>>, %arg4: memref<64x1xf32, #tpu.memory_space<vmem>>, %arg5: memref<64x128xf32, #tpu.memory_space<vmem>>) attributes {dimension_semantics = [#tpu.dimension_semantics<parallel>, #tpu.dimension_semantics<arbitrary>], iteration_bounds = array<i64: 2, 1>, scalar_prefetch = 0 : i64, scratch_operands = 0 : i64, tpu.core_type = #tpu.core_type<tc>, window_params = [{transform_indices = @transform_0, window_bounds = array<i64: 64, 128>}, {pipeline_mode = #tpu.pipeline_mode<synchronous>, transform_indices = @transform_1, window_bounds = array<i64: 128, 128>}, {transform_indices = @transform_2, window_bounds = array<i64: 64, 1>}, {transform_indices = @transform_3, window_bounds = array<i64: 64, 128>}]} {
    %c0_i32 = arith.constant 0 : i32
    %0 = arith.cmpi eq, %arg1, %c0_i32 : i32
    %1 = arith.extui %0 : i1 to i32
    %c0_i32_0 = arith.constant 0 : i32
    %2 = arith.cmpi ne, %1, %c0_i32_0 : i32
    scf.if %2 {
      %cst_9 = arith.constant 0.000000e+00 : f32
      %16 = vector.broadcast %cst_9 : f32 to vector<64x128xf32>
      %c0_10 = arith.constant 0 : index
      %c0_11 = arith.constant 0 : index
      %17 = vector.load %arg5[%c0_10, %c0_11] : memref<64x128xf32, #tpu.memory_space<vmem>>, vector<64x128xf32>
      tpu.vector_store %arg5[%c0_10, %c0_11], %16 {strides = array<i32>} : memref<64x128xf32, #tpu.memory_space<vmem>>, vector<64x128xf32>,
    } else {
    }
    %c128_i32 = arith.constant 128 : i32
    %3 = arith.muli %arg1, %c128_i32 : i32
    %4 = tpu.assume_multiple %3, 128 : i32
    %5 = arith.index_cast %4 : i32 to index
    %c0 = arith.constant 0 : index
    %6 = vector.load %arg3[%5, %c0] : memref<128x128xbf16, #tpu.memory_space<vmem>>, vector<128x128xbf16>
    %c0_1 = arith.constant 0 : index
    %c0_2 = arith.constant 0 : index
    %7 = vector.load %arg5[%c0_1, %c0_2] : memref<64x128xf32, #tpu.memory_space<vmem>>, vector<64x128xf32>
    %c0_3 = arith.constant 0 : index
    %c0_4 = arith.constant 0 : index
    %8 = vector.load %arg2[%c0_3, %c0_4] : memref<64x128xi8, #tpu.memory_space<vmem>>, vector<64x128xi8>
    %9 = arith.sitofp %8 : vector<64x128xi8> to vector<64x128xbf16>
    %cst = arith.constant dense<0.000000e+00> : vector<64x128xf32>
    %10 = tpu.matmul %9, %6, %cst {dimension_numbers = #tpu.dot_dimension_numbers<[1], [0], [0], [1], [0, 0, 1, 1], [], []>} : vector<64x128xbf16>, vector<128x128xbf16>, vector<64x128xf32> -> vector<64x128xf32>
    %11 = arith.addf %7, %10 : vector<64x128xf32>
    %c0_5 = arith.constant 0 : index
    %c0_6 = arith.constant 0 : index
    %12 = vector.load %arg5[%c0_5, %c0_6] : memref<64x128xf32, #tpu.memory_space<vmem>>, vector<64x128xf32>
    tpu.vector_store %arg5[%c0_5, %c0_6], %11 {strides = array<i32>} : memref<64x128xf32, #tpu.memory_space<vmem>>, vector<64x128xf32>,
    %c0_i32_7 = arith.constant 0 : i32
    %13 = arith.cmpi eq, %arg1, %c0_i32_7 : i32
    %14 = arith.extui %13 : i1 to i32
    %c0_i32_8 = arith.constant 0 : i32
    %15 = arith.cmpi ne, %14, %c0_i32_8 : i32
    scf.if %15 {
      %c0_9 = arith.constant 0 : index
      %c0_10 = arith.constant 0 : index
      %16 = vector.load %arg5[%c0_9, %c0_10] : memref<64x128xf32, #tpu.memory_space<vmem>>, vector<64x128xf32>
      %c0_11 = arith.constant 0 : index
      %c0_12 = arith.constant 0 : index
      %17 = vector.load %arg4[%c0_11, %c0_12] : memref<64x1xf32, #tpu.memory_space<vmem>>, vector<64x1xf32>
      %18 = vector.broadcast %17 : vector<64x1xf32> to vector<64x128xf32>
      %19 = arith.mulf %16, %18 : vector<64x128xf32>
      %cst_13 = arith.constant 0.000000e+00 : f32
      %20 = vector.broadcast %cst_13 : f32 to vector<64x128xf32>
      %21 = arith.maximumf %19, %20 : vector<64x128xf32>
      %22 = arith.mulf %21, %21 : vector<64x128xf32>
      %cst_14 = arith.constant dense<0.000000e+00> : vector<64xf32>
      %23 = vector.multi_reduction <add>, %22, %cst_14 [1] : vector<64x128xf32> to vector<64xf32>
      %24 = vector.shape_cast %23 : vector<64xf32> to vector<64x1xf32>
      %cst_15 = arith.constant 1.000000e-24 : f32
      %25 = vector.broadcast %cst_15 : f32 to vector<64x1xf32>
      %26 = arith.maximumf %24, %25 : vector<64x1xf32>
      %27 = math.rsqrt %26 : vector<64x1xf32>
      %28 = vector.broadcast %27 : vector<64x1xf32> to vector<64x128xf32>
      %29 = arith.mulf %21, %28 : vector<64x128xf32>
      %c0_16 = arith.constant 0 : index
      %c0_17 = arith.constant 0 : index
      %30 = vector.load %arg5[%c0_16, %c0_17] : memref<64x128xf32, #tpu.memory_space<vmem>>, vector<64x128xf32>
      tpu.vector_store %arg5[%c0_16, %c0_17], %29 {strides = array<i32>} : memref<64x128xf32, #tpu.memory_space<vmem>>, vector<64x128xf32>,
    } else {
    }
    return
  }
  func.func @transform_0(%arg0: i32, %arg1: i32) -> (i32, i32) {
    %c0_i32 = arith.constant 0 : i32
    return %arg0, %arg1 : i32, i32
  }
  func.func @transform_1(%arg0: i32, %arg1: i32) -> (i32, i32) {
    %c0_i32 = arith.constant 0 : i32
    %c0_i32_0 = arith.constant 0 : i32
    %c0_i32_1 = arith.constant 0 : i32
    return %c0_i32, %c0_i32_0 : i32, i32
  }
  func.func @transform_2(%arg0: i32, %arg1: i32) -> (i32, i32) {
    %c0_i32 = arith.constant 0 : i32
    %c0_i32_0 = arith.constant 0 : i32
    return %arg0, %c0_i32 : i32, i32
  }
  func.func @transform_3(%arg0: i32, %arg1: i32) -> (i32, i32) {
    %c0_i32 = arith.constant 0 : i32
    %c0_i32_0 = arith.constant 0 : i32
    return %arg0, %c0_i32 : i32, i32
  }
}

</mosaic_0001>

<bundles_post_ra>
// kernel: gcn_v2e2v_forward.2
= control target key start
LH: loop header
LB: loop body
LE: loop exit
PB: predicated region body
PF: predicated region fallthrough
CT: control target
= control target key end

     0   :  { %s721_s12 = smov 0   ;;  %s723_s13 = smov 0   ;;  %s799_s0 = inlined_call_operand.vmem [shape: s8[128,128], index: 0, kind: input, shape index: {}]   ;;  %s800_s1 = inlined_call_operand.vmem [shape: bf16[128,128], index: 1, kind: input, shape index: {}]   ;;  %s801_s2 = inlined_call_operand.vmem [shape: f32[128,1], index: 2, kind: input, shape index: {}]   ;;  %s802_s3 = inlined_call_operand.vmem [shape: bf16[128,128], index: 3, kind: output, shape index: {}]  }
   0x1   :  { %s725_s14 = smov 0  }
   0x2 LB: > { %s25_s15 = sadd.s32 1, %s694_s13  ;;  %p552_p0 = scmp.ge.s32.totalorder %s698_s14, 1  ;;  %s698_s14 = sphi %s725_s14, %s13_s14   ;;  %s694_s13 = sphi %s723_s13, %s804_s13   ;;  %s690_s12 = sphi %s721_s12, %s803_s12  }
   0x3   : > { %p27_p1 = scmp.ge.s32.totalorder %s25_s15, 2  ;;  %p166_p2 = scmp.lt.s32.totalorder %s698_s14, 3 }
   0x5   : > { %s806_s15 = smov (%p27_p1, %s25_s15), 0  ;;  %p167_p3 = pnand %p552_p0, %p166_p2 }
   0x6   : > { %s555_s18 = sshll.u32 (!%p167_p3), %s690_s12, 3  ;;  %s553_s19 = sshll.u32 (!%p167_p3), %s690_s12, 1 }
   0x7   : > { %170 = sbr.rel (%p167_p3) target bundleno = 194 (0xc2), region = 32  ;;  %p208_p4 = scmp.lt.s32.totalorder (!%p167_p3), %s555_s18, 15 }
   0x8   : > { %p199_p5 = scmp.lt.s32.totalorder (!%p167_p3), %s553_s19, 3 }
   0xc   : > { %v600_v0 = vld [vmem:[%s800_s1 + $0x38] sm:$0xff]  ;;  %v700_v1 = vmov 0   ;;  %v599_v2 = vld [vmem:[%s800_s1 + $0x30] sm:$0xff]  ;;  %s808_s18 = smov (!%p208_p4, %s555_s18), 15  ;;  %v598_v3 = vld [vmem:[%s800_s1 + $0x28] sm:$0xff]  ;;  %s810_s19 = smov (!%p199_p5, %s553_s19), 3 }
   0xd   : > { %674 = vset.pattern.permute.xlu1 %v700_v1  ;;  %673 = vset.pattern.permute.xlu0 %v700_v1  ;;  %s556_s22 = sshll.u32 %s808_s18, 3  ;;  %v597_v7 = vld [vmem:[%s800_s1 + $0x20] sm:$0xff]  ;;  %s554_s30 = sshll.u32 %s810_s19, 3  ;;  %v596_v10 = vld [vmem:[%s800_s1 + $0x18] sm:$0xff]  ;;  %v595_v12 = vld [vmem:[%s800_s1 + $0x10] sm:$0xff] }
   0xe   : > { %330 = vmatpush.bf16.msra.mxu0 %v600_v0  ;;  %624 = vmatpush.bf16.msra.mxu1 %v600_v0  ;;  %s758_s27 = scalar_lea.vmem %s801_s2, %s556_s22  ;;  %s205_s8 = scalar_lea.vmem %s799_s0, %s554_s30  ;;  %v594_v21 = vld [vmem:[%s800_s1 + $0x8] sm:$0xff]  ;;  %v593_v30 = vld [vmem:[%s800_s1] sm:$0xff] }
   0xf   : > { %625 = vmatpush.bf16.msra.mxu2 %v600_v0  ;;  %626 = vmatpush.bf16.msra.mxu3 %v600_v0  ;;  %v388_v4 = vld [vmem:[%s758_s27 + $0x10] sm:$0xff]  ;;  %v386_v5 = vld [vmem:[%s758_s27] sm:$0xff]  ;;  %v389_v8 = vld [vmem:[%s758_s27 + $0x18] sm:$0xff]  ;;  %s558_s19 = sshll.u32 %s808_s18, 2 }
  0x10   : > { %675 = vset.pattern.permute.xlu2 %v700_v1  ;;  %406 = vperm.xlu1 %674, %v388_v4   ;;  %v390_v6 = vld [vmem:[%s758_s27 + $0x20] sm:$0xff]  ;;  %v387_v9 = vld [vmem:[%s758_s27 + $0x8] sm:$0xff]  ;;  %v393_v19 = vld [vmem:[%s758_s27 + $0x38] sm:$0xff]  ;;  %s217_s22 = scalar_lea.vmem %s802_s3, %s558_s19 }
  0x11   : > { %396 = vperm.xlu0 %673, %v386_v5   ;;  %416 = vperm.xlu2 %675, %v390_v6   ;;  %v391_v11 = vld [vmem:[%s758_s27 + $0x28] sm:$0xff]  ;;  %v260_v13 = vld [vmem:[%s205_s8] sm:$0xff]  ;;  %v392_v20 = vld [vmem:[%s758_s27 + $0x30] sm:$0xff] }
  0x12   : > { %331 = vmatpush.bf16.msra.mxu0 %v599_v2  ;;  %627 = vmatpush.bf16.msra.mxu1 %v599_v2  ;;  %v261_v14 = vld [vmem:[%s205_s8 + $0x8] sm:$0xff]  ;;  %v262_v15 = vunpack.c.0.s8 %v260_v13  ;;  %v263_v16 = vunpack.c.1.s8 %v260_v13  ;;  %v264_v17 = vunpack.c.2.s8 %v260_v13  ;;  %v265_v18 = vunpack.c.3.s8 %v260_v13 }
  0x13   : > { %628 = vmatpush.bf16.msra.mxu2 %v599_v2  ;;  %629 = vmatpush.bf16.msra.mxu3 %v599_v2  ;;  %v266_v22 = vunpack.c.0.s8 %v261_v14  ;;  %v267_v23 = vunpack.c.1.s8 %v261_v14  ;;  %v268_v24 = vunpack.c.2.s8 %v261_v14  ;;  %v269_v25 = vunpack.c.3.s8 %v261_v14 }
  0x14   : > { %v270_v26 = vcvt.s32.f32 %v262_v15  ;;  %v271_v27 = vcvt.s32.f32 %v263_v16  ;;  %v272_v28 = vcvt.s32.f32 %v264_v17  ;;  %v273_v29 = vcvt.s32.f32 %v265_v18 }
  0x15   : > { %v274_v31 = vcvt.s32.f32 %v266_v22  ;;  %v275_v32 = vcvt.s32.f32 %v267_v23  ;;  %v276_v33 = vcvt.s32.f32 %v268_v24  ;;  %v277_v34 = vcvt.s32.f32 %v269_v25 }
  0x16   : > { %332 = vmatpush.bf16.msra.mxu0 %v598_v3  ;;  %630 = vmatpush.bf16.msra.mxu1 %v598_v3  ;;  %v278_v35 = vpack.c.bf16 %v271_v27, %v270_v26  ;;  %v279_v36 = vpack.c.bf16 %v273_v29, %v272_v28 }
  0x17   : > { %631 = vmatpush.bf16.msra.mxu2 %v598_v3  ;;  %632 = vmatpush.bf16.msra.mxu3 %v598_v3  ;;  %v280_v37 = vpack.c.bf16 %v275_v32, %v274_v31  ;;  %v281_v38 = vpack.c.bf16 %v277_v34, %v276_v33 }
  0x18   : > { %411 = vperm.xlu1 %674, %v389_v8  }
  0x19   : > { %401 = vperm.xlu0 %673, %v387_v9   ;;  %421 = vperm.xlu2 %675, %v391_v11  }
  0x1a   : > { %333 = vmatpush.bf16.msra.mxu0 %v597_v7  ;;  %633 = vmatpush.bf16.msra.mxu1 %v597_v7 }
  0x1b   : > { %634 = vmatpush.bf16.msra.mxu2 %v597_v7  ;;  %635 = vmatpush.bf16.msra.mxu3 %v597_v7 }
  0x1e   : > { %334 = vmatpush.bf16.msra.mxu0 %v596_v10  ;;  %636 = vmatpush.bf16.msra.mxu1 %v596_v10 }
  0x1f   : > { %637 = vmatpush.bf16.msra.mxu2 %v596_v10  ;;  %638 = vmatpush.bf16.msra.mxu3 %v596_v10 }
  0x20   : > { %431 = vperm.xlu1 %674, %v393_v19  }
  0x21   : > { %426 = vperm.xlu0 %673, %v392_v20  }
  0x22   : > { %335 = vmatpush.bf16.msra.mxu0 %v595_v12  ;;  %639 = vmatpush.bf16.msra.mxu1 %v595_v12 }
  0x23   : > { %640 = vmatpush.bf16.msra.mxu2 %v595_v12  ;;  %641 = vmatpush.bf16.msra.mxu3 %v595_v12 }
  0x26   : > { %336 = vmatpush.bf16.msra.mxu0 %v594_v21  ;;  %642 = vmatpush.bf16.msra.mxu1 %v594_v21 }
  0x27   : > { %643 = vmatpush.bf16.msra.mxu2 %v594_v21  ;;  %644 = vmatpush.bf16.msra.mxu3 %v594_v21 }
  0x2a   : > { %337 = vmatpush.bf16.msra.mxu0 %v593_v30  ;;  %645 = vmatpush.bf16.msra.mxu1 %v593_v30 }
  0x2b   : > { %646 = vmatpush.bf16.msra.mxu2 %v593_v30  ;;  %647 = vmatpush.bf16.msra.mxu3 %v593_v30 }
  0x2d   : > { %338 = vmatmul.bf16.vlgmr.msra.gmra.mxu0 %v278_v35  ;;  %343 = vmatmul.bf16.vlgmr.msra.gmra.mxu1 %v279_v36 }
  0x2e   : > { %348 = vmatmul.bf16.vlgmr.msra.gmra.mxu2 %v280_v37  ;;  %353 = vmatmul.bf16.vlgmr.msra.gmra.mxu3 %v281_v38 }
  0x6b   : > { %v417_v45 = vpop.permute.xlu2 %416 }
  0x73   : > { %v422_v62 = vpop.permute.xlu2 %421 }
  0x82   : > { %v407_v40 = vpop.permute.xlu1 %406 }
  0x83   : > { %v397_v39 = vpop.permute.xlu0 %396 }
  0x8a   : > { %v412_v44 = vpop.permute.xlu1 %411 }
  0x8b   : > { %v402_v43 = vpop.permute.xlu0 %401 }
  0x92   : > { %v432_v61 = vpop.permute.xlu1 %431 }
  0x93   : > { %v427_v58 = vpop.permute.xlu0 %426 }
  0xaa   : > { %v339_v41 = vpop.f32.mrf.mxu0  ;;  %v344_v42 = vpop.f32.mrf.mxu1 }
  0xab   : > { %v434_v46 = vmul.f32 %v397_v39, %v339_v41  ;;  %v436_v47 = vmul.f32 %v407_v40, %v344_v42 }
  0xad   : > { %v442_v54 = vmax.f32 %v434_v46, 0.0  ;;  %v444_v55 = vmax.f32 %v436_v47, 0.0 }
  0xb1   : > { %v349_v48 = vpop.f32.mrf.mxu2  ;;  %v354_v49 = vpop.f32.mrf.mxu3 }
  0xb2   : > { %v341_v50 = vpop.f32.mrf.mxu0  ;;  %v346_v51 = vpop.f32.mrf.mxu1  ;;  %v438_v63 = vmul.f32 %v417_v45, %v349_v48  ;;  %v440_v0 = vmul.f32 %v427_v58, %v354_v49 }
  0xb3   : > { %v435_v52 = vmul.f32 %v402_v43, %v341_v50  ;;  %v437_v53 = vmul.f32 %v412_v44, %v346_v51 }
  0xb4   : > { %v446_v5 = vmax.f32 %v438_v63, 0.0  ;;  %v448_v6 = vmax.f32 %v440_v0, 0.0 }
  0xb5   : > { %v443_v56 = vmax.f32 %v435_v52, 0.0  ;;  %v445_v57 = vmax.f32 %v437_v53, 0.0 }
  0xb7   : > { %v604_v59 = vpack.c.bf16 %v443_v56, %v442_v54  ;;  %v609_v60 = vpack.c.bf16 %v445_v57, %v444_v55 }
  0xb9   : > { %605 = vst [vmem:[%s217_s22] sm:$0xff] %v604_v59   ;;  %v351_v1 = vpop.f32.mrf.mxu2  ;;  %v356_v2 = vpop.f32.mrf.mxu3 }
  0xba   : > { %621 = vst [vmem:[%s217_s22 + $0x8] sm:$0xff] %v609_v60   ;;  %v439_v3 = vmul.f32 %v422_v62, %v351_v1  ;;  %v441_v4 = vmul.f32 %v432_v61, %v356_v2 }
  0xbc   : > { %v447_v7 = vmax.f32 %v439_v3, 0.0  ;;  %v449_v8 = vmax.f32 %v441_v4, 0.0 }
  0xbe   : > { %v614_v9 = vpack.c.bf16 %v447_v7, %v446_v5  ;;  %v619_v10 = vpack.c.bf16 %v449_v8, %v448_v6 }
  0xc0   : > { %622 = vst [vmem:[%s217_s22 + $0x10] sm:$0xff] %v614_v9  }
  0xc1   : > { %623 = vst [vmem:[%s217_s22 + $0x18] sm:$0xff] %v619_v10  }
  0xc2 PF: > { %s13_s14 = sadd.s32 1, %s698_s14   ;;  %s803_s12 = smov %s694_s13 }
  0xc3   : > { %p10_p6 = scmp.ge.s32.totalorder %s13_s14, 4   ;;  %s804_s13 = smov %s806_s15 }
  0xc5   :  { %12 = sbr.rel (!%p10_p6) target bundleno = 2 (0x2), region = 74 }

// kernel: gcn_v2e2v_forward.3
= control target key start
LH: loop header
LB: loop body
LE: loop exit
PB: predicated region body
PF: predicated region fallthrough
CT: control target
= control target key end

     0   :  { %s827_s12 = smov 0   ;;  %s829_s13 = smov 0   ;;  %s979_s0 = inlined_call_operand.vmem [shape: s8[128,128], index: 0, kind: input, shape index: {}]   ;;  %s980_s1 = inlined_call_operand.vmem [shape: bf16[128,128], index: 1, kind: input, shape index: {}]   ;;  %s981_s2 = inlined_call_operand.vmem [shape: f32[128,1], index: 2, kind: input, shape index: {}]   ;;  %s982_s3 = inlined_call_operand.vmem [shape: f32[128,128], index: 3, kind: output, shape index: {}]  }
   0x1   :  { %s831_s14 = smov 0  }
   0x2 LB: > { %s25_s15 = sadd.s32 1, %s800_s13  ;;  %p664_p0 = scmp.ge.s32.totalorder %s804_s14, 1  ;;  %s804_s14 = sphi %s831_s14, %s13_s14   ;;  %s800_s13 = sphi %s829_s13, %s984_s13   ;;  %s796_s12 = sphi %s827_s12, %s983_s12  }
   0x3   : > { %p27_p1 = scmp.ge.s32.totalorder %s25_s15, 2  ;;  %p166_p2 = scmp.lt.s32.totalorder %s804_s14, 3 }
   0x5   : > { %s986_s15 = smov (%p27_p1, %s25_s15), 0  ;;  %p167_p3 = pnand %p664_p0, %p166_p2 }
   0x6   : > { %s665_s18 = sshll.u32 (!%p167_p3), %s796_s12, 1  ;;  %s667_s19 = sshll.u32 (!%p167_p3), %s796_s12, 3 }
   0x7   : > { %170 = sbr.rel (%p167_p3) target bundleno = 340 (0x154), region = 32  ;;  %p208_p4 = scmp.lt.s32.totalorder (!%p167_p3), %s667_s19, 15 }
   0x8   : > { %p199_p5 = scmp.lt.s32.totalorder (!%p167_p3), %s665_s18, 3 }
   0xc   : > { %v712_v0 = vld [vmem:[%s980_s1 + $0x38] sm:$0xff]  ;;  %v806_v1 = vmov 0   ;;  %v711_v2 = vld [vmem:[%s980_s1 + $0x30] sm:$0xff]  ;;  %s988_s19 = smov (!%p208_p4, %s667_s19), 15  ;;  %v710_v3 = vld [vmem:[%s980_s1 + $0x28] sm:$0xff]  ;;  %s990_s18 = smov (!%p199_p5, %s665_s18), 3 }
   0xd   : > { %763 = vset.pattern.permute.xlu0 %v806_v1  ;;  %764 = vset.pattern.permute.xlu1 %v806_v1  ;;  %s668_s24 = sshll.u32 %s988_s19, 3  ;;  %v709_v6 = vld [vmem:[%s980_s1 + $0x20] sm:$0xff]  ;;  %s666_s30 = sshll.u32 %s990_s18, 3  ;;  %v708_v8 = vld [vmem:[%s980_s1 + $0x18] sm:$0xff]  ;;  %v707_v12 = vld [vmem:[%s980_s1 + $0x10] sm:$0xff] }
   0xe   : > { %330 = vmatpush.bf16.msra.mxu0 %v712_v0  ;;  %713 = vmatpush.bf16.msra.mxu1 %v712_v0  ;;  %s866_s27 = scalar_lea.vmem %s981_s2, %s668_s24  ;;  %s205_s8 = scalar_lea.vmem %s979_s0, %s666_s30  ;;  %v706_v19 = vld [vmem:[%s980_s1 + $0x8] sm:$0xff]  ;;  %v705_v30 = vld [vmem:[%s980_s1] sm:$0xff] }
   0xf   : > { %714 = vmatpush.bf16.msra.mxu2 %v712_v0  ;;  %715 = vmatpush.bf16.msra.mxu3 %v712_v0  ;;  %v386_v4 = vld [vmem:[%s866_s27] sm:$0xff]  ;;  %v388_v5 = vld [vmem:[%s866_s27 + $0x10] sm:$0xff]  ;;  %v387_v9 = vld [vmem:[%s866_s27 + $0x8] sm:$0xff]  ;;  %s943_s21 = scalar_lea.vmem %s982_s3, %s668_s24 }
  0x10   : > { %765 = vset.pattern.permute.xlu2 %v806_v1  ;;  %396 = vperm.xlu0 %763, %v386_v4   ;;  %v390_v7 = vld [vmem:[%s866_s27 + $0x20] sm:$0xff]  ;;  %v389_v10 = vld [vmem:[%s866_s27 + $0x18] sm:$0xff]  ;;  %v391_v11 = vld [vmem:[%s866_s27 + $0x28] sm:$0xff] }
  0x11   : > { %406 = vperm.xlu1 %764, %v388_v5   ;;  %416 = vperm.xlu2 %765, %v390_v7   ;;  %v260_v13 = vld [vmem:[%s205_s8] sm:$0xff]  ;;  %v261_v14 = vld [vmem:[%s205_s8 + $0x8] sm:$0xff]  ;;  %v392_v24 = vld [vmem:[%s866_s27 + $0x30] sm:$0xff] }
  0x12   : > { %331 = vmatpush.bf16.msra.mxu0 %v711_v2  ;;  %716 = vmatpush.bf16.msra.mxu1 %v711_v2  ;;  %v262_v15 = vunpack.c.0.s8 %v260_v13  ;;  %v263_v16 = vunpack.c.1.s8 %v260_v13  ;;  %v264_v17 = vunpack.c.2.s8 %v260_v13  ;;  %v265_v18 = vunpack.c.3.s8 %v260_v13  ;;  %v393_v25 = vld [vmem:[%s866_s27 + $0x38] sm:$0xff] }
  0x13   : > { %717 = vmatpush.bf16.msra.mxu2 %v711_v2  ;;  %718 = vmatpush.bf16.msra.mxu3 %v711_v2  ;;  %v266_v20 = vunpack.c.0.s8 %v261_v14  ;;  %v267_v21 = vunpack.c.1.s8 %v261_v14  ;;  %v268_v22 = vunpack.c.2.s8 %v261_v14  ;;  %v269_v23 = vunpack.c.3.s8 %v261_v14 }
  0x14   : > { %v270_v26 = vcvt.s32.f32 %v262_v15  ;;  %v271_v27 = vcvt.s32.f32 %v263_v16  ;;  %v272_v28 = vcvt.s32.f32 %v264_v17  ;;  %v273_v29 = vcvt.s32.f32 %v265_v18 }
  0x15   : > { %v274_v31 = vcvt.s32.f32 %v266_v20  ;;  %v275_v32 = vcvt.s32.f32 %v267_v21  ;;  %v276_v33 = vcvt.s32.f32 %v268_v22  ;;  %v277_v34 = vcvt.s32.f32 %v269_v23 }
  0x16   : > { %332 = vmatpush.bf16.msra.mxu0 %v710_v3  ;;  %719 = vmatpush.bf16.msra.mxu1 %v710_v3  ;;  %v278_v35 = vpack.c.bf16 %v271_v27, %v270_v26  ;;  %v279_v36 = vpack.c.bf16 %v273_v29, %v272_v28 }
  0x17   : > { %720 = vmatpush.bf16.msra.mxu2 %v710_v3  ;;  %721 = vmatpush.bf16.msra.mxu3 %v710_v3  ;;  %v280_v37 = vpack.c.bf16 %v275_v32, %v274_v31  ;;  %v281_v38 = vpack.c.bf16 %v277_v34, %v276_v33 }
  0x18   : > { %401 = vperm.xlu0 %763, %v387_v9  }
  0x19   : > { %411 = vperm.xlu1 %764, %v389_v10   ;;  %421 = vperm.xlu2 %765, %v391_v11  }
  0x1a   : > { %333 = vmatpush.bf16.msra.mxu0 %v709_v6  ;;  %722 = vmatpush.bf16.msra.mxu1 %v709_v6 }
  0x1b   : > { %723 = vmatpush.bf16.msra.mxu2 %v709_v6  ;;  %724 = vmatpush.bf16.msra.mxu3 %v709_v6 }
  0x1e   : > { %334 = vmatpush.bf16.msra.mxu0 %v708_v8  ;;  %725 = vmatpush.bf16.msra.mxu1 %v708_v8 }
  0x1f   : > { %726 = vmatpush.bf16.msra.mxu2 %v708_v8  ;;  %727 = vmatpush.bf16.msra.mxu3 %v708_v8 }
  0x20   : > { %426 = vperm.xlu0 %763, %v392_v24  }
  0x21   : > { %431 = vperm.xlu1 %764, %v393_v25  }
  0x22   : > { %335 = vmatpush.bf16.msra.mxu0 %v707_v12  ;;  %728 = vmatpush.bf16.msra.mxu1 %v707_v12 }
  0x23   : > { %729 = vmatpush.bf16.msra.mxu2 %v707_v12  ;;  %730 = vmatpush.bf16.msra.mxu3 %v707_v12 }
  0x26   : > { %336 = vmatpush.bf16.msra.mxu0 %v706_v19  ;;  %731 = vmatpush.bf16.msra.mxu1 %v706_v19 }
  0x27   : > { %732 = vmatpush.bf16.msra.mxu2 %v706_v19  ;;  %733 = vmatpush.bf16.msra.mxu3 %v706_v19 }
  0x2a   : > { %337 = vmatpush.bf16.msra.mxu0 %v705_v30  ;;  %734 = vmatpush.bf16.msra.mxu1 %v705_v30 }
  0x2b   : > { %735 = vmatpush.bf16.msra.mxu2 %v705_v30  ;;  %736 = vmatpush.bf16.msra.mxu3 %v705_v30 }
  0x2d   : > { %338 = vmatmul.bf16.vlgmr.msra.gmra.mxu0 %v278_v35  ;;  %343 = vmatmul.bf16.vlgmr.msra.gmra.mxu1 %v279_v36 }
  0x2e   : > { %348 = vmatmul.bf16.vlgmr.msra.gmra.mxu2 %v280_v37  ;;  %353 = vmatmul.bf16.vlgmr.msra.gmra.mxu3 %v281_v38 }
  0x6b   : > { %v417_v48 = vpop.permute.xlu2 %416 }
  0x73   : > { %v422_v5 = vpop.permute.xlu2 %421 }
  0x82   : > { %v397_v39 = vpop.permute.xlu0 %396 }
  0x83   : > { %v407_v43 = vpop.permute.xlu1 %406 }
  0x8a   : > { %v402_v40 = vpop.permute.xlu0 %401 }
  0x8b   : > { %v412_v60 = vpop.permute.xlu1 %411 }
  0x92   : > { %v427_v55 = vpop.permute.xlu0 %426 }
  0x93   : > { %v432_v9 = vpop.permute.xlu1 %431 }
  0xaa   : > { %v339_v41 = vpop.f32.mrf.mxu0  ;;  %v344_v42 = vpop.f32.mrf.mxu1 }
  0xab   : > { %v436_v44 = vmul.f32 %v407_v43, %v344_v42  ;;  %v434_v45 = vmul.f32 %v397_v39, %v339_v41 }
  0xad   : > { %v894_v46 = vmax.f32 %v436_v44, 0.0  ;;  %v896_v47 = vmax.f32 %v434_v45, 0.0 }
  0xaf   : > { %v452_v51 = vmul.f32 %v894_v46, %v894_v46  ;;  %v450_v52 = vmul.f32 %v896_v47, %v896_v47 }
  0xb1   : > { %v349_v49 = vpop.f32.mrf.mxu2  ;;  %v354_v50 = vpop.f32.mrf.mxu3  ;;  %462 = vadd.xlane.f32.xlu1 %v452_v51  ;;  %458 = vadd.xlane.f32.xlu2 %v450_v52 }
  0xb2   : > { %v341_v53 = vpop.f32.mrf.mxu0  ;;  %v346_v54 = vpop.f32.mrf.mxu1  ;;  %v438_v56 = vmul.f32 %v417_v48, %v349_v49  ;;  %v440_v57 = vmul.f32 %v427_v55, %v354_v50 }
  0xb3   : > { %v435_v58 = vmul.f32 %v402_v40, %v341_v53  ;;  %v437_v0 = vmul.f32 %v412_v60, %v346_v54 }
  0xb4   : > { %v902_v59 = vmax.f32 %v438_v56, 0.0  ;;  %v904_v61 = vmax.f32 %v440_v57, 0.0 }
  0xb5   : > { %v906_v62 = vmax.f32 %v435_v58, 0.0  ;;  %v914_v7 = vmax.f32 %v437_v0, 0.0 }
  0xb6   : > { %v454_v63 = vmul.f32 %v902_v59, %v902_v59  ;;  %v456_v2 = vmul.f32 %v904_v61, %v904_v61 }
  0xb7   : > { %v451_v3 = vmul.f32 %v906_v62, %v906_v62  ;;  %v453_v11 = vmul.f32 %v914_v7, %v914_v7 }
  0xb9   : > { %v351_v1 = vpop.f32.mrf.mxu2  ;;  %v356_v4 = vpop.f32.mrf.mxu3  ;;  %470 = vadd.xlane.f32.xlu1 %v456_v2  ;;  %466 = vadd.xlane.f32.xlu2 %v454_v63 }
  0xba   : > { %v439_v6 = vmul.f32 %v422_v5, %v351_v1  ;;  %460 = vadd.xlane.f32.xlu0 %v451_v3  ;;  %v441_v10 = vmul.f32 %v432_v9, %v356_v4 }
  0xbc   : > { %v916_v8 = vmax.f32 %v439_v6, 0.0  ;;  %v922_v13 = vmax.f32 %v441_v10, 0.0 }
  0xbe   : > { %v455_v12 = vmul.f32 %v916_v8, %v916_v8  ;;  %v457_v14 = vmul.f32 %v922_v13, %v922_v13 }
  0xc1   : > { %464 = vadd.xlane.f32.xlu2 %v453_v11 }
  0xc2   : > { %468 = vadd.xlane.f32.xlu0 %v455_v12 }
  0xc9   : > { %472 = vadd.xlane.f32.xlu2 %v457_v14 }
 0x124   : > { %v463_v15 = vpop.xlane.xlu1 %462  ;;  %v459_v16 = vpop.xlane.xlu2 %458 }
 0x125   : > { %v476_v17 = vmax.f32 %v463_v15, 1e-24  ;;  %v474_v18 = vmax.f32 %v459_v16, 1e-24 }
 0x127   : > { %766 = vrsqrt.f32 %v476_v17  ;;  %vm508_vm0 = vweird.f32 %v476_v17  ;;  %vm488_vm4 = vweird.f32 %v474_v18 }
 0x128   : > { %768 = vrsqrt.f32 %v474_v18 }
 0x12c   : > { %v471_v19 = vpop.xlane.xlu1 %470  ;;  %v467_v20 = vpop.xlane.xlu2 %466 }
 0x12d   : > { %v767_v21 = vpop.eup %766  ;;  %v480_v22 = vmax.f32 %v471_v19, 1e-24  ;;  %v926_v23 = vmax.f32 %v467_v20, 1e-24  ;;  %v461_v24 = vpop.xlane.xlu0 %460 }
 0x12e   : > { %v769_v25 = vpop.eup %768  ;;  %v503_v26 = vmul.f32 %v767_v21, %v476_v17  ;;  %v928_v27 = vmax.f32 %v461_v24, 1e-24  ;;  %vm509_vm1 = vweird.f32 %v767_v21 }
 0x12f   : > { %v483_v28 = vmul.f32 %v769_v25, %v474_v18  ;;  %770 = vrsqrt.f32 %v480_v22  ;;  %vm489_vm2 = vweird.f32 %v769_v25  ;;  %vm510_vm3 = vmor %vm508_vm0, %vm509_vm1  ;;  %vm548_vm7 = vweird.f32 %v480_v22 }
 0x130   : > { %v504_v29 = vmul.f32 %v767_v21, %v503_v26  ;;  %772 = vrsqrt.f32 %v926_v23  ;;  %vm490_vm5 = vmor %vm488_vm4, %vm489_vm2  ;;  %vm528_vm11 = vweird.f32 %v926_v23  ;;  %vm498_vm13 = vweird.f32 %v928_v27 }
 0x131   : > { %v484_v30 = vmul.f32 %v769_v25, %v483_v28  ;;  %774 = vrsqrt.f32 %v928_v27 }
 0x132   : > { %v505_v31 = vmul.f32 0.5, %v504_v29 }
 0x133   : > { %v485_v32 = vmul.f32 0.5, %v484_v30 }
 0x134   : > { %v506_v33 = vsub.f32 1.5, %v505_v31  ;;  %v465_v34 = vpop.xlane.xlu2 %464 }
 0x135   : > { %v771_v35 = vpop.eup %770  ;;  %v486_v36 = vsub.f32 1.5, %v485_v32  ;;  %v932_v37 = vmax.f32 %v465_v34, 1e-24  ;;  %v469_v38 = vpop.xlane.xlu0 %468 }
 0x136   : > { %v773_v39 = vpop.eup %772  ;;  %v507_v40 = vmul.f32 %v767_v21, %v506_v33  ;;  %v543_v41 = vmul.f32 %v771_v35, %v480_v22  ;;  %v934_v42 = vmax.f32 %v469_v38, 1e-24  ;;  %vm549_vm6 = vweird.f32 %v771_v35 }
 0x137   : > { %v775_v43 = vpop.eup %774  ;;  %v487_v44 = vmul.f32 %v769_v25, %v486_v36  ;;  %v523_v45 = vmul.f32 %v773_v39, %v926_v23  ;;  %776 = vrsqrt.f32 %v932_v37  ;;  %vm529_vm8 = vweird.f32 %v773_v39  ;;  %vm550_vm10 = vmor %vm548_vm7, %vm549_vm6 }
 0x138   : > { %v511_v48 = vsel %vm510_vm3, %v767_v21, %v507_v40  ;;  %v544_v49 = vmul.f32 %v771_v35, %v543_v41  ;;  %v493_v50 = vmul.f32 %v775_v43, %v928_v27  ;;  %778 = vrsqrt.f32 %v934_v42  ;;  %vm530_vm12 = vmor %vm528_vm11, %vm529_vm8 }
 0x139   : > { %v564_v51 = vmul.f32 %v511_v48, %v894_v46  ;;  %v491_v52 = vsel %vm490_vm5, %v769_v25, %v487_v44  ;;  %v524_v53 = vmul.f32 %v773_v39, %v523_v45  ;;  %vm499_vm9 = vweird.f32 %v775_v43 }
 0x13a   : > { %v562_v54 = vmul.f32 %v491_v52, %v896_v47  ;;  %v545_v55 = vmul.f32 0.5, %v544_v49  ;;  %v494_v56 = vmul.f32 %v775_v43, %v493_v50  ;;  %vm500_vm14 = vmor %vm498_vm13, %vm499_vm9  ;;  %vm518_vm0 = vweird.f32 %v932_v37 }
 0x13b   : > { %572 = vst [vmem:[%s943_s21 + $0x10] sm:$0xff] %v564_v51  ;;  %v525_v57 = vmul.f32 0.5, %v524_v53  ;;  %vm538_vm3 = vweird.f32 %v934_v42 }
 0x13c   : > { %570 = vst [vmem:[%s943_s21] sm:$0xff] %v562_v54  ;;  %v546_v58 = vsub.f32 1.5, %v545_v55  ;;  %v495_v60 = vmul.f32 0.5, %v494_v56  ;;  %v473_v63 = vpop.xlane.xlu2 %472 }
 0x13d   : > { %v777_v0 = vpop.eup %776  ;;  %v526_v1 = vsub.f32 1.5, %v525_v57  ;;  %v481_v46 = vmax.f32 %v473_v63, 1e-24 }
 0x13e   : > { %v547_v2 = vmul.f32 %v771_v35, %v546_v58  ;;  %v496_v3 = vsub.f32 1.5, %v495_v60  ;;  %v513_v47 = vmul.f32 %v777_v0, %v932_v37  ;;  %v779_v5 = vpop.eup %778  ;;  %vm519_vm15 = vweird.f32 %v777_v0 }
 0x13f   : > { %v527_v4 = vmul.f32 %v773_v39, %v526_v1  ;;  %780 = vrsqrt.f32 %v481_v46  ;;  %v533_v14 = vmul.f32 %v779_v5, %v934_v42  ;;  %vm520_vm1 = vmor %vm518_vm0, %vm519_vm15  ;;  %vm539_vm2 = vweird.f32 %v779_v5 }
 0x140   : > { %v551_v6 = vsel %vm550_vm10, %v771_v35, %v547_v2  ;;  %v497_v9 = vmul.f32 %v775_v43, %v496_v3  ;;  %v514_v10 = vmul.f32 %v777_v0, %v513_v47  ;;  %vm540_vm4 = vmor %vm538_vm3, %vm539_vm2  ;;  %vm558_vm6 = vweird.f32 %v481_v46 }
 0x141   : > { %v568_v11 = vmul.f32 %v551_v6, %v904_v61  ;;  %v531_v12 = vsel %vm530_vm12, %v773_v39, %v527_v4  ;;  %v534_v19 = vmul.f32 %v779_v5, %v533_v14 }
 0x142   : > { %v566_v15 = vmul.f32 %v531_v12, %v902_v59  ;;  %v501_v16 = vsel %vm500_vm14, %v775_v43, %v497_v9  ;;  %v515_v17 = vmul.f32 0.5, %v514_v10 }
 0x143   : > { %576 = vst [vmem:[%s943_s21 + $0x30] sm:$0xff] %v568_v11  ;;  %v563_v18 = vmul.f32 %v501_v16, %v906_v62  ;;  %v535_v22 = vmul.f32 0.5, %v534_v19 }
 0x144   : > { %574 = vst [vmem:[%s943_s21 + $0x20] sm:$0xff] %v566_v15  ;;  %v516_v20 = vsub.f32 1.5, %v515_v17 }
 0x145   : > { %v781_v21 = vpop.eup %780  ;;  %571 = vst [vmem:[%s943_s21 + $0x8] sm:$0xff] %v563_v18  ;;  %v536_v59 = vsub.f32 1.5, %v535_v22 }
 0x146   : > { %v517_v61 = vmul.f32 %v777_v0, %v516_v20  ;;  %v553_v23 = vmul.f32 %v781_v21, %v481_v46  ;;  %vm559_vm5 = vweird.f32 %v781_v21 }
 0x147   : > { %v537_v26 = vmul.f32 %v779_v5, %v536_v59  ;;  %vm560_vm7 = vmor %vm558_vm6, %vm559_vm5 }
 0x148   : > { %v521_v24 = vsel %vm520_vm1, %v777_v0, %v517_v61  ;;  %v554_v25 = vmul.f32 %v781_v21, %v553_v23 }
 0x149   : > { %v565_v62 = vmul.f32 %v521_v24, %v914_v7  ;;  %v541_v28 = vsel %vm540_vm4, %v779_v5, %v537_v26 }
 0x14a   : > { %v555_v27 = vmul.f32 0.5, %v554_v25  ;;  %v567_v29 = vmul.f32 %v541_v28, %v916_v8 }
 0x14b   : > { %573 = vst [vmem:[%s943_s21 + $0x18] sm:$0xff] %v565_v62 }
 0x14c   : > { %v556_v30 = vsub.f32 1.5, %v555_v27  ;;  %575 = vst [vmem:[%s943_s21 + $0x28] sm:$0xff] %v567_v29 }
 0x14e   : > { %v557_v31 = vmul.f32 %v781_v21, %v556_v30 }
 0x150   : > { %v561_v32 = vsel %vm560_vm7, %v781_v21, %v557_v31 }
 0x151   : > { %v569_v33 = vmul.f32 %v561_v32, %v922_v13 }
 0x153   : > { %577 = vst [vmem:[%s943_s21 + $0x38] sm:$0xff] %v569_v33 }
 0x154 PF: > { %s13_s14 = sadd.s32 1, %s804_s14   ;;  %s983_s12 = smov %s800_s13 }
 0x155   : > { %p10_p6 = scmp.ge.s32.totalorder %s13_s14, 4   ;;  %s984_s13 = smov %s986_s15 }
 0x157   :  { %12 = sbr.rel (!%p10_p6) target bundleno = 2 (0x2), region = 74 }

</bundles_post_ra>
